<compile_context>
chip_gen: v7x
topology: tpu7x:2x2x1
jax: 0.10.0
libtpu: 0.0.40
codegen_flags: <defaults>
</compile_context>

<pallas_src>
from functools import partial

import numpy as np
import jax
import jax.numpy as jnp
from jax.experimental import pallas as pl
from jax.experimental.pallas import tpu as pltpu


def _round_up(x, m):
    return (x + m - 1) // m * m


def _hann_window(win_length):
    # torch.hann_window default (periodic=True)
    n = np.arange(win_length)
    return 0.5 - 0.5 * np.cos(2.0 * np.pi * n / win_length)


def _padded_window(fft_size, win_length):
    # torch.stft zero-pads the window to n_fft, centered.
    win = np.zeros(fft_size, np.float64)
    lpad = (fft_size - win_length) // 2
    win[lpad:lpad + win_length] = _hann_window(win_length)
    return win


def _build_dft_basis(fft_size, win_length, n_half_pad):
    """(n_fft, 2*n_half_pad) operator: frames @ basis == [real | imag] of the windowed
    one-sided DFT for bins 0..n_fft//2-1 (Nyquist bin handled in the wrapper).
    Columns beyond n_half in each half are zero padding for lane-dense tiles."""
    n_half = fft_size // 2
    win = _padded_window(fft_size, win_length)
    n = np.arange(fft_size)[:, None]
    k = np.arange(n_half)[None, :]
    ang = 2.0 * np.pi * n * k / fft_size
    basis = np.zeros((fft_size, 2 * n_half_pad), np.float32)
    basis[:, :n_half] = (win[:, None] * np.cos(ang)).astype(np.float32)
    basis[:, n_half_pad:n_half_pad + n_half] = (-win[:, None] * np.sin(ang)).astype(np.float32)
    return basis


def _frame(x, fft_size, hop_size):
    """torch.stft framing: center=True, reflect pad n_fft//2 each side, frame len n_fft."""
    B, T = x.shape
    pad = fft_size // 2
    xp = jnp.pad(x, ((0, 0), (pad, pad)), mode="reflect")
    n_frames = (T + 2 * pad - fft_size) // hop_size + 1
    idx = np.arange(n_frames)[:, None] * hop_size + np.arange(fft_size)[None, :]
    return xp[:, idx]                                       # (B, n_frames, n_fft)


def _fold_to_vreg(t):
    """(TM, N) -> (8, 128) partial sum using only sublane/lane-aligned static slices,
    i.e. pure elementwise vreg adds on the VPU (no XLU cross-lane reduce)."""
    tm, n = t.shape
    r = t[0:8, :]
    for i in range(1, tm // 8):
        r = r + t[i * 8:(i + 1) * 8, :]
    c = r[:, 0:128]
    for j in range(1, n // 128):
        c = c + r[:, j * 128:(j + 1) * 128]
    return c


def _make_kernel(n_half_pad):
    def kernel(x_ref, y_ref, w_ref, o_ref):
        w = w_ref[...]
        # Two lane-dense MXU GEMMs against the resident DFT basis (f32 accumulation).
        zx = jnp.dot(x_ref[...], w, preferred_element_type=jnp.float32)
        zy = jnp.dot(y_ref[...], w, preferred_element_type=jnp.float32)
        re_x, im_x = zx[:, :n_half_pad], zx[:, n_half_pad:]
        re_y, im_y = zy[:, :n_half_pad], zy[:, n_half_pad:]
        px = jnp.maximum(re_x * re_x + im_x * im_x, 1e-7)   # clamped powers
        py = jnp.maximum(re_y * re_y + im_y * im_y, 1e-7)
        # (y_mag - x_mag)^2 == px + py - 2*sqrt(px*py): one EUP sqrt per bin pair.
        t_diff = (px + py) - 2.0 * jnp.sqrt(px * py)
        # |log y_mag - log x_mag| == 0.5*|log py - log px|: no sqrt on this path.
        t_logd = 0.5 * jnp.abs(jnp.log(py) - jnp.log(px))
        # Padded rows/columns have px == py == 1e-7 exactly -> contribute 0 to t_diff
        # and t_logd; only sum(py) needs a (constant) correction, done in the wrapper.
        o_ref[0, 0, :, :] = _fold_to_vreg(t_diff)
        o_ref[0, 1, :, :] = _fold_to_vreg(py)
        o_ref[0, 2, :, :] = _fold_to_vreg(t_logd)
    return kernel


@partial(jax.jit, static_argnames=("fft_size", "hop_size", "win_length",
                                   "compute_dtype", "tile_m"))
def stft_loss(x, y, fft_size=1024, hop_size=120, win_length=600,
              compute_dtype=jnp.bfloat16, tile_m=256):
    """Returns (spectral_convergence_loss, log_stft_magnitude_loss) for x, y of shape (B, T)."""
    B, T = x.shape
    n_bins = fft_size // 2 + 1
    n_half = fft_size // 2
    n_half_pad = _round_up(n_half, 128)

    # TODO(synk): move framing into the kernel (stream overlapping signal slabs from HBM
    # via memory_space=pl.ANY) to cut the ~n_fft/hop x HBM inflation of this gather.
    xf = _frame(x, fft_size, hop_size).astype(jnp.float32)
    yf = _frame(y, fft_size, hop_size).astype(jnp.float32)
    n_frames = xf.shape[1]
    bf = B * n_frames
    xf = xf.reshape(bf, fft_size)
    yf = yf.reshape(bf, fft_size)

    # Nyquist bin (k = n_fft/2): real = sum_n w[n]*x[n]*(-1)^n, imag = 0. Handled here so
    # the kernel GEMM keeps an exact multiple-of-128 N with no dead columns.
    win = _padded_window(fft_size, win_length).astype(np.float32)
    nyq_vec = jnp.asarray(win * ((-1.0) ** np.arange(fft_size)).astype(np.float32))
    p_nyq_x = jnp.maximum(jnp.square(xf @ nyq_vec), 1e-7)
    p_nyq_y = jnp.maximum(jnp.square(yf @ nyq_vec), 1e-7)
    nyq_diff = jnp.sum(jnp.square(jnp.sqrt(p_nyq_y) - jnp.sqrt(p_nyq_x)))
    nyq_sq_y = jnp.sum(p_nyq_y)
    nyq_logd = jnp.sum(0.5 * jnp.abs(jnp.log(p_nyq_y) - jnp.log(p_nyq_x)))

    # Pad frame count to a multiple of the M tile (no partial last grid block).
    tm = min(tile_m, _round_up(bf, 128))
    bf_pad = _round_up(bf, tm)
    grid_m = bf_pad // tm
    pad_rows = bf_pad - bf
    xf_p = jnp.pad(xf, ((0, pad_rows), (0, 0))).astype(compute_dtype)
    yf_p = jnp.pad(yf, ((0, pad_rows), (0, 0))).astype(compute_dtype)
    basis = jnp.asarray(_build_dft_basis(fft_size, win_length, n_half_pad)).astype(compute_dtype)

    bytes_per = jnp.dtype(compute_dtype).itemsize
    cost = pl.CostEstimate(
        flops=2 * 2 * bf_pad * fft_size * (2 * n_half_pad),
        transcendentals=3 * bf_pad * n_half_pad,
        bytes_accessed=(2 * bf_pad * fft_size + fft_size * 2 * n_half_pad) * bytes_per
                       + grid_m * 3 * 8 * 128 * 4,
    )

    partials = pl.pallas_call(
        _make_kernel(n_half_pad),
        out_shape=jax.ShapeDtypeStruct((grid_m, 3, 8, 128), jnp.float32),
        grid=(grid_m,),
        in_specs=[
            pl.BlockSpec((tm, fft_size), lambda i: (i, 0)),            # x frame tile
            pl.BlockSpec((tm, fft_size), lambda i: (i, 0)),            # y frame tile
            pl.BlockSpec((fft_size, 2 * n_half_pad), lambda i: (0, 0)),  # resident basis
        ],
        out_specs=pl.BlockSpec((1, 3, 8, 128), lambda i: (i, 0, 0, 0)),
        compiler_params=pltpu.CompilerParams(
            dimension_semantics=("parallel",),
            vmem_limit_bytes=32 * 1024 * 1024,
        ),
        cost_estimate=cost,
    )(xf_p, yf_p, basis)

    sums = jnp.sum(partials, axis=(0, 2, 3))
    # Every padded (row or column) entry contributes exactly 1e-7 to sum(py).
    pad_count = bf_pad * n_half_pad - bf * n_half
    sum_sq_diff = sums[0] + nyq_diff
    sum_sq_y = sums[1] - jnp.float32(pad_count * 1e-7) + nyq_sq_y
    sum_abs_logdiff = sums[2] + nyq_logd

    sc_loss = jnp.sqrt(sum_sq_diff) / jnp.sqrt(sum_sq_y)
    mag_loss = sum_abs_logdiff / (bf * n_bins)               # F.l1_loss mean reduction
    return sc_loss, mag_loss


# ------------------------- pure-JAX reference (via rfft) -------------------------

def _reference_stft_mag(x, fft_size, hop_size, win_length):
    frames = _frame(x, fft_size, hop_size)
    win = _padded_window(fft_size, win_length).astype(np.float32)
    spec = jnp.fft.rfft(frames * jnp.asarray(win)[None, None, :], n=fft_size, axis=-1)
    power = jnp.real(spec) ** 2 + jnp.imag(spec) ** 2
    return jnp.sqrt(jnp.maximum(power, 1e-7))


def reference_stft_loss(x, y, fft_size, hop_size, win_length):
    x_mag = _reference_stft_mag(x, fft_size, hop_size, win_length)
    y_mag = _reference_stft_mag(y, fft_size, hop_size, win_length)
    sc = jnp.linalg.norm((y_mag - x_mag).ravel()) / jnp.linalg.norm(y_mag.ravel())
    mag = jnp.mean(jnp.abs(jnp.log(y_mag) - jnp.log(x_mag)))
    return sc, mag


if __name__ == "__main__":
    # Small-shape STFTLoss config (module defaults are 1024/120/600; scaled down).
    B, T = 2, 512
    fft_size, hop_size, win_length = 128, 32, 64

    key = jax.random.PRNGKey(0)
    kx, ky = jax.random.split(key)
    x = jax.random.normal(kx, (B, T), dtype=jnp.float32) * 0.5      # "predicted" signal
    y = x + 0.1 * jax.random.normal(ky, (B, T), dtype=jnp.float32)  # "groundtruth" signal

    sc_ref, mag_ref = reference_stft_loss(x, y, fft_size, hop_size, win_length)

    # f32 GEMM path: tight tolerance vs the rfft reference (true module semantics).
    sc32, mag32 = jax.block_until_ready(
        stft_loss(x, y, fft_size=fft_size, hop_size=hop_size, win_length=win_length,
                  compute_dtype=jnp.float32))
    np.testing.assert_allclose(np.asarray(sc32), np.asarray(sc_ref), rtol=2e-3, atol=1e-5)
    np.testing.assert_allclose(np.asarray(mag32), np.asarray(mag_ref), rtol=2e-3, atol=1e-5)

    # bf16 GEMM path (default, full-rate MXU): looser tolerance vs the f32 reference.
    scbf, magbf = jax.block_until_ready(
        stft_loss(x, y, fft_size=fft_size, hop_size=hop_size, win_length=win_length))
    np.testing.assert_allclose(np.asarray(scbf), np.asarray(sc_ref), rtol=5e-2, atol=1e-3)
    np.testing.assert_allclose(np.asarray(magbf), np.asarray(mag_ref), rtol=5e-2, atol=1e-3)

    print("KERNEL_OK")
</pallas_src>

<mosaic_0001>
module attributes {stable_mosaic.version = 11 : i64} {
  func.func @kernel(%arg0: i32, %arg1: memref<128x128xf32, #tpu.memory_space<vmem>>, %arg2: memref<128x128xf32, #tpu.memory_space<vmem>>, %arg3: memref<128x256xf32, #tpu.memory_space<vmem>>, %arg4: memref<1x3x8x128xf32, #tpu.memory_space<vmem>>) attributes {dimension_semantics = [#tpu.dimension_semantics<parallel>], iteration_bounds = array<i64: 1>, scalar_prefetch = 0 : i64, scratch_operands = 0 : i64, tpu.core_type = #tpu.core_type<tc>, window_params = [{transform_indices = @transform_0, window_bounds = array<i64: 128, 128>}, {transform_indices = @transform_1, window_bounds = array<i64: 128, 128>}, {pipeline_mode = #tpu.pipeline_mode<synchronous>, transform_indices = @transform_2, window_bounds = array<i64: 128, 256>}, {transform_indices = @transform_3, window_bounds = array<i64: 1, 3, 8, 128>}]} {
    %c0 = arith.constant 0 : index
    %c0_0 = arith.constant 0 : index
    %0 = vector.load %arg3[%c0, %c0_0] : memref<128x256xf32, #tpu.memory_space<vmem>>, vector<128x256xf32>
    %c0_1 = arith.constant 0 : index
    %c0_2 = arith.constant 0 : index
    %1 = vector.load %arg1[%c0_1, %c0_2] : memref<128x128xf32, #tpu.memory_space<vmem>>, vector<128x128xf32>
    %cst = arith.constant dense<0.000000e+00> : vector<128x256xf32>
    %2 = tpu.matmul %1, %0, %cst {dimension_numbers = #tpu.dot_dimension_numbers<[1], [0], [0], [1], [0, 0, 1, 1], [], []>} : vector<128x128xf32>, vector<128x256xf32>, vector<128x256xf32> -> vector<128x256xf32>
    %c0_3 = arith.constant 0 : index
    %c0_4 = arith.constant 0 : index
    %3 = vector.load %arg2[%c0_3, %c0_4] : memref<128x128xf32, #tpu.memory_space<vmem>>, vector<128x128xf32>
    %cst_5 = arith.constant dense<0.000000e+00> : vector<128x256xf32>
    %4 = tpu.matmul %3, %0, %cst_5 {dimension_numbers = #tpu.dot_dimension_numbers<[1], [0], [0], [1], [0, 0, 1, 1], [], []>} : vector<128x128xf32>, vector<128x256xf32>, vector<128x256xf32> -> vector<128x256xf32>
    %5 = vector.extract_strided_slice %2 {offsets = [0, 0], sizes = [128, 128], strides = [1, 1]} : vector<128x256xf32> to vector<128x128xf32>
    %6 = vector.extract_strided_slice %2 {offsets = [0, 128], sizes = [128, 128], strides = [1, 1]} : vector<128x256xf32> to vector<128x128xf32>
    %7 = vector.extract_strided_slice %4 {offsets = [0, 0], sizes = [128, 128], strides = [1, 1]} : vector<128x256xf32> to vector<128x128xf32>
    %8 = vector.extract_strided_slice %4 {offsets = [0, 128], sizes = [128, 128], strides = [1, 1]} : vector<128x256xf32> to vector<128x128xf32>
    %9 = arith.mulf %5, %5 : vector<128x128xf32>
    %10 = arith.mulf %6, %6 : vector<128x128xf32>
    %11 = arith.addf %9, %10 : vector<128x128xf32>
    %cst_6 = arith.constant 1.000000e-07 : f32
    %12 = vector.broadcast %cst_6 : f32 to vector<128x128xf32>
    %13 = arith.maximumf %11, %12 : vector<128x128xf32>
    %14 = arith.mulf %7, %7 : vector<128x128xf32>
    %15 = arith.mulf %8, %8 : vector<128x128xf32>
    %16 = arith.addf %14, %15 : vector<128x128xf32>
    %cst_7 = arith.constant 1.000000e-07 : f32
    %17 = vector.broadcast %cst_7 : f32 to vector<128x128xf32>
    %18 = arith.maximumf %16, %17 : vector<128x128xf32>
    %19 = arith.addf %13, %18 : vector<128x128xf32>
    %20 = arith.mulf %13, %18 : vector<128x128xf32>
    %21 = math.sqrt %20 : vector<128x128xf32>
    %cst_8 = arith.constant 2.000000e+00 : f32
    %22 = vector.broadcast %cst_8 : f32 to vector<128x128xf32>
    %23 = arith.mulf %22, %21 : vector<128x128xf32>
    %24 = arith.subf %19, %23 : vector<128x128xf32>
    %25 = math.log %18 : vector<128x128xf32>
    %26 = math.log %13 : vector<128x128xf32>
    %27 = arith.subf %25, %26 : vector<128x128xf32>
    %28 = math.absf %27 : vector<128x128xf32>
    %cst_9 = arith.constant 5.000000e-01 : f32
    %29 = vector.broadcast %cst_9 : f32 to vector<128x128xf32>
    %30 = arith.mulf %29, %28 : vector<128x128xf32>
    %31 = vector.extract_strided_slice %24 {offsets = [0, 0], sizes = [8, 128], strides = [1, 1]} : vector<128x128xf32> to vector<8x128xf32>
    %32 = vector.extract_strided_slice %24 {offsets = [8, 0], sizes = [8, 128], strides = [1, 1]} : vector<128x128xf32> to vector<8x128xf32>
    %33 = arith.addf %31, %32 : vector<8x128xf32>
    %34 = vector.extract_strided_slice %24 {offsets = [16, 0], sizes = [8, 128], strides = [1, 1]} : vector<128x128xf32> to vector<8x128xf32>
    %35 = arith.addf %33, %34 : vector<8x128xf32>
    %36 = vector.extract_strided_slice %24 {offsets = [24, 0], sizes = [8, 128], strides = [1, 1]} : vector<128x128xf32> to vector<8x128xf32>
    %37 = arith.addf %35, %36 : vector<8x128xf32>
    %38 = vector.extract_strided_slice %24 {offsets = [32, 0], sizes = [8, 128], strides = [1, 1]} : vector<128x128xf32> to vector<8x128xf32>
    %39 = arith.addf %37, %38 : vector<8x128xf32>
    %40 = vector.extract_strided_slice %24 {offsets = [40, 0], sizes = [8, 128], strides = [1, 1]} : vector<128x128xf32> to vector<8x128xf32>
    %41 = arith.addf %39, %40 : vector<8x128xf32>
    %42 = vector.extract_strided_slice %24 {offsets = [48, 0], sizes = [8, 128], strides = [1, 1]} : vector<128x128xf32> to vector<8x128xf32>
    %43 = arith.addf %41, %42 : vector<8x128xf32>
    %44 = vector.extract_strided_slice %24 {offsets = [56, 0], sizes = [8, 128], strides = [1, 1]} : vector<128x128xf32> to vector<8x128xf32>
    %45 = arith.addf %43, %44 : vector<8x128xf32>
    %46 = vector.extract_strided_slice %24 {offsets = [64, 0], sizes = [8, 128], strides = [1, 1]} : vector<128x128xf32> to vector<8x128xf32>
    %47 = arith.addf %45, %46 : vector<8x128xf32>
    %48 = vector.extract_strided_slice %24 {offsets = [72, 0], sizes = [8, 128], strides = [1, 1]} : vector<128x128xf32> to vector<8x128xf32>
    %49 = arith.addf %47, %48 : vector<8x128xf32>
    %50 = vector.extract_strided_slice %24 {offsets = [80, 0], sizes = [8, 128], strides = [1, 1]} : vector<128x128xf32> to vector<8x128xf32>
    %51 = arith.addf %49, %50 : vector<8x128xf32>
    %52 = vector.extract_strided_slice %24 {offsets = [88, 0], sizes = [8, 128], strides = [1, 1]} : vector<128x128xf32> to vector<8x128xf32>
    %53 = arith.addf %51, %52 : vector<8x128xf32>
    %54 = vector.extract_strided_slice %24 {offsets = [96, 0], sizes = [8, 128], strides = [1, 1]} : vector<128x128xf32> to vector<8x128xf32>
    %55 = arith.addf %53, %54 : vector<8x128xf32>
    %56 = vector.extract_strided_slice %24 {offsets = [104, 0], sizes = [8, 128], strides = [1, 1]} : vector<128x128xf32> to vector<8x128xf32>
    %57 = arith.addf %55, %56 : vector<8x128xf32>
    %58 = vector.extract_strided_slice %24 {offsets = [112, 0], sizes = [8, 128], strides = [1, 1]} : vector<128x128xf32> to vector<8x128xf32>
    %59 = arith.addf %57, %58 : vector<8x128xf32>
    %60 = vector.extract_strided_slice %24 {offsets = [120, 0], sizes = [8, 128], strides = [1, 1]} : vector<128x128xf32> to vector<8x128xf32>
    %61 = arith.addf %59, %60 : vector<8x128xf32>
    %c0_10 = arith.constant 0 : index
    %c0_11 = arith.constant 0 : index
    %c0_12 = arith.constant 0 : index
    %c0_13 = arith.constant 0 : index
    %62 = vector.load %arg4[%c0_10, %c0_11, %c0_12, %c0_13] : memref<1x3x8x128xf32, #tpu.memory_space<vmem>>, vector<1x1x8x128xf32>
    %63 = vector.shape_cast %62 : vector<1x1x8x128xf32> to vector<8x128xf32>
    %64 = vector.shape_cast %61 : vector<8x128xf32> to vector<1x1x8x128xf32>
    tpu.vector_store %arg4[%c0_10, %c0_11, %c0_12, %c0_13], %64 {strides = array<i32>} : memref<1x3x8x128xf32, #tpu.memory_space<vmem>>, vector<1x1x8x128xf32>,
    %65 = vector.extract_strided_slice %18 {offsets = [0, 0], sizes = [8, 128], strides = [1, 1]} : vector<128x128xf32> to vector<8x128xf32>
    %66 = vector.extract_strided_slice %18 {offsets = [8, 0], sizes = [8, 128], strides = [1, 1]} : vector<128x128xf32> to vector<8x128xf32>
    %67 = arith.addf %65, %66 : vector<8x128xf32>
    %68 = vector.extract_strided_slice %18 {offsets = [16, 0], sizes = [8, 128], strides = [1, 1]} : vector<128x128xf32> to vector<8x128xf32>
    %69 = arith.addf %67, %68 : vector<8x128xf32>
    %70 = vector.extract_strided_slice %18 {offsets = [24, 0], sizes = [8, 128], strides = [1, 1]} : vector<128x128xf32> to vector<8x128xf32>
    %71 = arith.addf %69, %70 : vector<8x128xf32>
    %72 = vector.extract_strided_slice %18 {offsets = [32, 0], sizes = [8, 128], strides = [1, 1]} : vector<128x128xf32> to vector<8x128xf32>
    %73 = arith.addf %71, %72 : vector<8x128xf32>
    %74 = vector.extract_strided_slice %18 {offsets = [40, 0], sizes = [8, 128], strides = [1, 1]} : vector<128x128xf32> to vector<8x128xf32>
    %75 = arith.addf %73, %74 : vector<8x128xf32>
    %76 = vector.extract_strided_slice %18 {offsets = [48, 0], sizes = [8, 128], strides = [1, 1]} : vector<128x128xf32> to vector<8x128xf32>
    %77 = arith.addf %75, %76 : vector<8x128xf32>
    %78 = vector.extract_strided_slice %18 {offsets = [56, 0], sizes = [8, 128], strides = [1, 1]} : vector<128x128xf32> to vector<8x128xf32>
    %79 = arith.addf %77, %78 : vector<8x128xf32>
    %80 = vector.extract_strided_slice %18 {offsets = [64, 0], sizes = [8, 128], strides = [1, 1]} : vector<128x128xf32> to vector<8x128xf32>
    %81 = arith.addf %79, %80 : vector<8x128xf32>
    %82 = vector.extract_strided_slice %18 {offsets = [72, 0], sizes = [8, 128], strides = [1, 1]} : vector<128x128xf32> to vector<8x128xf32>
    %83 = arith.addf %81, %82 : vector<8x128xf32>
    %84 = vector.extract_strided_slice %18 {offsets = [80, 0], sizes = [8, 128], strides = [1, 1]} : vector<128x128xf32> to vector<8x128xf32>
    %85 = arith.addf %83, %84 : vector<8x128xf32>
    %86 = vector.extract_strided_slice %18 {offsets = [88, 0], sizes = [8, 128], strides = [1, 1]} : vector<128x128xf32> to vector<8x128xf32>
    %87 = arith.addf %85, %86 : vector<8x128xf32>
    %88 = vector.extract_strided_slice %18 {offsets = [96, 0], sizes = [8, 128], strides = [1, 1]} : vector<128x128xf32> to vector<8x128xf32>
    %89 = arith.addf %87, %88 : vector<8x128xf32>
    %90 = vector.extract_strided_slice %18 {offsets = [104, 0], sizes = [8, 128], strides = [1, 1]} : vector<128x128xf32> to vector<8x128xf32>
    %91 = arith.addf %89, %90 : vector<8x128xf32>
    %92 = vector.extract_strided_slice %18 {offsets = [112, 0], sizes = [8, 128], strides = [1, 1]} : vector<128x128xf32> to vector<8x128xf32>
    %93 = arith.addf %91, %92 : vector<8x128xf32>
    %94 = vector.extract_strided_slice %18 {offsets = [120, 0], sizes = [8, 128], strides = [1, 1]} : vector<128x128xf32> to vector<8x128xf32>
    %95 = arith.addf %93, %94 : vector<8x128xf32>
    %c0_14 = arith.constant 0 : index
    %c1 = arith.constant 1 : index
    %c0_15 = arith.constant 0 : index
    %c0_16 = arith.constant 0 : index
    %96 = vector.load %arg4[%c0_14, %c1, %c0_15, %c0_16] : memref<1x3x8x128xf32, #tpu.memory_space<vmem>>, vector<1x1x8x128xf32>
    %97 = vector.shape_cast %96 : vector<1x1x8x128xf32> to vector<8x128xf32>
    %98 = vector.shape_cast %95 : vector<8x128xf32> to vector<1x1x8x128xf32>
    tpu.vector_store %arg4[%c0_14, %c1, %c0_15, %c0_16], %98 {strides = array<i32>} : memref<1x3x8x128xf32, #tpu.memory_space<vmem>>, vector<1x1x8x128xf32>,
    %99 = vector.extract_strided_slice %30 {offsets = [0, 0], sizes = [8, 128], strides = [1, 1]} : vector<128x128xf32> to vector<8x128xf32>
    %100 = vector.extract_strided_slice %30 {offsets = [8, 0], sizes = [8, 128], strides = [1, 1]} : vector<128x128xf32> to vector<8x128xf32>
    %101 = arith.addf %99, %100 : vector<8x128xf32>
    %102 = vector.extract_strided_slice %30 {offsets = [16, 0], sizes = [8, 128], strides = [1, 1]} : vector<128x128xf32> to vector<8x128xf32>
    %103 = arith.addf %101, %102 : vector<8x128xf32>
    %104 = vector.extract_strided_slice %30 {offsets = [24, 0], sizes = [8, 128], strides = [1, 1]} : vector<128x128xf32> to vector<8x128xf32>
    %105 = arith.addf %103, %104 : vector<8x128xf32>
    %106 = vector.extract_strided_slice %30 {offsets = [32, 0], sizes = [8, 128], strides = [1, 1]} : vector<128x128xf32> to vector<8x128xf32>
    %107 = arith.addf %105, %106 : vector<8x128xf32>
    %108 = vector.extract_strided_slice %30 {offsets = [40, 0], sizes = [8, 128], strides = [1, 1]} : vector<128x128xf32> to vector<8x128xf32>
    %109 = arith.addf %107, %108 : vector<8x128xf32>
    %110 = vector.extract_strided_slice %30 {offsets = [48, 0], sizes = [8, 128], strides = [1, 1]} : vector<128x128xf32> to vector<8x128xf32>
    %111 = arith.addf %109, %110 : vector<8x128xf32>
    %112 = vector.extract_strided_slice %30 {offsets = [56, 0], sizes = [8, 128], strides = [1, 1]} : vector<128x128xf32> to vector<8x128xf32>
    %113 = arith.addf %111, %112 : vector<8x128xf32>
    %114 = vector.extract_strided_slice %30 {offsets = [64, 0], sizes = [8, 128], strides = [1, 1]} : vector<128x128xf32> to vector<8x128xf32>
    %115 = arith.addf %113, %114 : vector<8x128xf32>
    %116 = vector.extract_strided_slice %30 {offsets = [72, 0], sizes = [8, 128], strides = [1, 1]} : vector<128x128xf32> to vector<8x128xf32>
    %117 = arith.addf %115, %116 : vector<8x128xf32>
    %118 = vector.extract_strided_slice %30 {offsets = [80, 0], sizes = [8, 128], strides = [1, 1]} : vector<128x128xf32> to vector<8x128xf32>
    %119 = arith.addf %117, %118 : vector<8x128xf32>
    %120 = vector.extract_strided_slice %30 {offsets = [88, 0], sizes = [8, 128], strides = [1, 1]} : vector<128x128xf32> to vector<8x128xf32>
    %121 = arith.addf %119, %120 : vector<8x128xf32>
    %122 = vector.extract_strided_slice %30 {offsets = [96, 0], sizes = [8, 128], strides = [1, 1]} : vector<128x128xf32> to vector<8x128xf32>
    %123 = arith.addf %121, %122 : vector<8x128xf32>
    %124 = vector.extract_strided_slice %30 {offsets = [104, 0], sizes = [8, 128], strides = [1, 1]} : vector<128x128xf32> to vector<8x128xf32>
    %125 = arith.addf %123, %124 : vector<8x128xf32>
    %126 = vector.extract_strided_slice %30 {offsets = [112, 0], sizes = [8, 128], strides = [1, 1]} : vector<128x128xf32> to vector<8x128xf32>
    %127 = arith.addf %125, %126 : vector<8x128xf32>
    %128 = vector.extract_strided_slice %30 {offsets = [120, 0], sizes = [8, 128], strides = [1, 1]} : vector<128x128xf32> to vector<8x128xf32>
    %129 = arith.addf %127, %128 : vector<8x128xf32>
    %c0_17 = arith.constant 0 : index
    %c2 = arith.constant 2 : index
    %c0_18 = arith.constant 0 : index
    %c0_19 = arith.constant 0 : index
    %130 = vector.load %arg4[%c0_17, %c2, %c0_18, %c0_19] : memref<1x3x8x128xf32, #tpu.memory_space<vmem>>, vector<1x1x8x128xf32>
    %131 = vector.shape_cast %130 : vector<1x1x8x128xf32> to vector<8x128xf32>
    %132 = vector.shape_cast %129 : vector<8x128xf32> to vector<1x1x8x128xf32>
    tpu.vector_store %arg4[%c0_17, %c2, %c0_18, %c0_19], %132 {strides = array<i32>} : memref<1x3x8x128xf32, #tpu.memory_space<vmem>>, vector<1x1x8x128xf32>,
    return
  }
  func.func @transform_0(%arg0: i32) -> (i32, i32) {
    %c0_i32 = arith.constant 0 : i32
    %c0_i32_0 = arith.constant 0 : i32
    return %arg0, %c0_i32 : i32, i32
  }
  func.func @transform_1(%arg0: i32) -> (i32, i32) {
    %c0_i32 = arith.constant 0 : i32
    %c0_i32_0 = arith.constant 0 : i32
    return %arg0, %c0_i32 : i32, i32
  }
  func.func @transform_2(%arg0: i32) -> (i32, i32) {
    %c0_i32 = arith.constant 0 : i32
    %c0_i32_0 = arith.constant 0 : i32
    %c0_i32_1 = arith.constant 0 : i32
    return %c0_i32, %c0_i32_0 : i32, i32
  }
  func.func @transform_3(%arg0: i32) -> (i32, i32, i32, i32) {
    %c0_i32 = arith.constant 0 : i32
    %c0_i32_0 = arith.constant 0 : i32
    %c0_i32_1 = arith.constant 0 : i32
    %c0_i32_2 = arith.constant 0 : i32
    return %arg0, %c0_i32, %c0_i32_0, %c0_i32_1 : i32, i32, i32, i32
  }
}

</mosaic_0001>

<bundles_post_ra>
// kernel: stft_loss.1
= control target key start
LH: loop header
LB: loop body
LE: loop exit
PB: predicated region body
PF: predicated region fallthrough
CT: control target
= control target key end

     0   :  { %v1033_v3 = vmov 0.0   ;;  %s1637_s2 = inlined_call_operand.vmem [shape: f32[128,256], index: 2, kind: input, shape index: {}]   ;;  %s1638_s0 = inlined_call_operand.vmem [shape: f32[128,128], index: 0, kind: input, shape index: {}]   ;;  %s1639_s1 = inlined_call_operand.vmem [shape: f32[128,128], index: 1, kind: input, shape index: {}]   ;;  %s1640_s3 = inlined_call_operand.vmem [shape: f32[1,3,8,128], index: 3, kind: output, shape index: {}]  }
   0x1   :  { %v15_v0 = vld [vmem:[%s1637_s2 + $0x8] sm:$0xff]  ;;  %v17_v1 = vld [vmem:[%s1637_s2 + $0x18] sm:$0xff]  ;;  %v14_v2 = vld [vmem:[%s1637_s2] sm:$0xff]  ;;  %126 = vmatprep.mubr.f32.mxu0 %v1033_v3  ;;  %303 = vmatprep.mubr.f32.mxu1 %v1033_v3 }
   0x2   :  { %v872_v4 = vpack.c.bf16 %v17_v1, %v15_v0  ;;  %v16_v5 = vld [vmem:[%s1637_s2 + $0x10] sm:$0xff]  ;;  %v19_v6 = vld [vmem:[%s1637_s2 + $0x28] sm:$0xff]  ;;  %v21_v7 = vld [vmem:[%s1637_s2 + $0x38] sm:$0xff] }
   0x3   :  { %v874_v8 = vpack.c.bf16 %v16_v5, %v14_v2  ;;  %v876_v9 = vpack.c.bf16 %v21_v7, %v19_v6  ;;  %v18_v10 = vld [vmem:[%s1637_s2 + $0x20] sm:$0xff]  ;;  %v20_v11 = vld [vmem:[%s1637_s2 + $0x30] sm:$0xff]  ;;  %v23_v12 = vld [vmem:[%s1637_s2 + $0x48] sm:$0xff] }
   0x4   :  { %873 = vmatprep.subr.bf16.mxu0 %v872_v4  ;;  %905 = vmatprep.subr.bf16.mxu1 %v872_v4  ;;  %v25_v13 = vld [vmem:[%s1637_s2 + $0x58] sm:$0xff]  ;;  %v878_v14 = vpack.c.bf16 %v20_v11, %v18_v10  ;;  %v22_v16 = vld [vmem:[%s1637_s2 + $0x40] sm:$0xff]  ;;  %v24_v17 = vld [vmem:[%s1637_s2 + $0x50] sm:$0xff] }
   0x5   :  { %875 = vmatpush1.bf16.msra.mxu0 %v874_v8  ;;  %907 = vmatpush1.bf16.msra.mxu1 %v874_v8  ;;  %v880_v15 = vpack.c.bf16 %v25_v13, %v23_v12  ;;  %v27_v18 = vld [vmem:[%s1637_s2 + $0x68] sm:$0xff]  ;;  %v29_v19 = vld [vmem:[%s1637_s2 + $0x78] sm:$0xff]  ;;  %v882_v20 = vpack.c.bf16 %v24_v17, %v22_v16  ;;  %v26_v22 = vld [vmem:[%s1637_s2 + $0x60] sm:$0xff] }
   0x6   :  { %877 = vmatprep.subr.bf16.mxu0 %v876_v9  ;;  %909 = vmatprep.subr.bf16.mxu1 %v876_v9  ;;  %v884_v21 = vpack.c.bf16 %v29_v19, %v27_v18  ;;  %v28_v23 = vld [vmem:[%s1637_s2 + $0x70] sm:$0xff]  ;;  %v31_v24 = vld [vmem:[%s1637_s2 + $0x88] sm:$0xff]  ;;  %v33_v25 = vld [vmem:[%s1637_s2 + $0x98] sm:$0xff] }
   0x7   :  { %v886_v26 = vpack.c.bf16 %v28_v23, %v26_v22  ;;  %v888_v27 = vpack.c.bf16 %v33_v25, %v31_v24  ;;  %v30_v28 = vld [vmem:[%s1637_s2 + $0x80] sm:$0xff]  ;;  %v32_v29 = vld [vmem:[%s1637_s2 + $0x90] sm:$0xff]  ;;  %v35_v30 = vld [vmem:[%s1637_s2 + $0xa8] sm:$0xff] }
   0x8   :  { %v37_v31 = vld [vmem:[%s1637_s2 + $0xb8] sm:$0xff]  ;;  %v890_v32 = vpack.c.bf16 %v32_v29, %v30_v28  ;;  %v34_v34 = vld [vmem:[%s1637_s2 + $0xa0] sm:$0xff]  ;;  %v36_v35 = vld [vmem:[%s1637_s2 + $0xb0] sm:$0xff] }
   0x9   :  { %879 = vmatpush1.bf16.msra.mxu0 %v878_v14  ;;  %911 = vmatpush1.bf16.msra.mxu1 %v878_v14  ;;  %v892_v33 = vpack.c.bf16 %v37_v31, %v35_v30  ;;  %v39_v36 = vld [vmem:[%s1637_s2 + $0xc8] sm:$0xff]  ;;  %v41_v37 = vld [vmem:[%s1637_s2 + $0xd8] sm:$0xff]  ;;  %v894_v38 = vpack.c.bf16 %v36_v35, %v34_v34  ;;  %v38_v40 = vld [vmem:[%s1637_s2 + $0xc0] sm:$0xff] }
   0xa   :  { %881 = vmatprep.subr.bf16.mxu0 %v880_v15  ;;  %913 = vmatprep.subr.bf16.mxu1 %v880_v15  ;;  %v896_v39 = vpack.c.bf16 %v41_v37, %v39_v36  ;;  %v40_v41 = vld [vmem:[%s1637_s2 + $0xd0] sm:$0xff]  ;;  %v43_v42 = vld [vmem:[%s1637_s2 + $0xe8] sm:$0xff]  ;;  %v45_v43 = vld [vmem:[%s1637_s2 + $0xf8] sm:$0xff] }
   0xb   :  { %v898_v44 = vpack.c.bf16 %v40_v41, %v38_v40  ;;  %v900_v45 = vpack.c.bf16 %v45_v43, %v43_v42  ;;  %v42_v46 = vld [vmem:[%s1637_s2 + $0xe0] sm:$0xff]  ;;  %v44_v47 = vld [vmem:[%s1637_s2 + $0xf0] sm:$0xff]  ;;  %v47_v51 = vld [vmem:[%s1638_s0 + $0x8] sm:$0xff] }
   0xc   :  { %v902_v48 = vpack.c.bf16 %v44_v47, %v42_v46  ;;  %v46_v49 = vld [vmem:[%s1638_s0] sm:$0xff]  ;;  %v224_v52 = vld [vmem:[%s1639_s1 + $0x8] sm:$0xff]  ;;  %v48_v53 = vld [vmem:[%s1638_s0 + $0x10] sm:$0xff] }
   0xd   :  { %883 = vmatpush1.bf16.msra.mxu0 %v882_v20  ;;  %915 = vmatpush1.bf16.msra.mxu1 %v882_v20  ;;  %v223_v50 = vld [vmem:[%s1639_s1] sm:$0xff]  ;;  %v225_v54 = vld [vmem:[%s1639_s1 + $0x10] sm:$0xff]  ;;  %v49_v55 = vld [vmem:[%s1638_s0 + $0x18] sm:$0xff] }
   0xe   :  { %885 = vmatprep.subr.bf16.mxu0 %v884_v21  ;;  %917 = vmatprep.subr.bf16.mxu1 %v884_v21  ;;  %v226_v56 = vld [vmem:[%s1639_s1 + $0x18] sm:$0xff]  ;;  %v50_v57 = vld [vmem:[%s1638_s0 + $0x20] sm:$0xff]  ;;  %v51_v59 = vld [vmem:[%s1638_s0 + $0x28] sm:$0xff] }
   0xf   :  { %v227_v58 = vld [vmem:[%s1639_s1 + $0x20] sm:$0xff]  ;;  %v228_v60 = vld [vmem:[%s1639_s1 + $0x28] sm:$0xff]  ;;  %v52_v61 = vld [vmem:[%s1638_s0 + $0x30] sm:$0xff] }
  0x10   :  { %v229_v62 = vld [vmem:[%s1639_s1 + $0x30] sm:$0xff]  ;;  %v53_v63 = vld [vmem:[%s1638_s0 + $0x38] sm:$0xff]  ;;  %v54_v1 = vld [vmem:[%s1638_s0 + $0x40] sm:$0xff] }
  0x11   :  { %887 = vmatpush1.bf16.msra.mxu0 %v886_v26  ;;  %919 = vmatpush1.bf16.msra.mxu1 %v886_v26  ;;  %v230_v0 = vld [vmem:[%s1639_s1 + $0x38] sm:$0xff]  ;;  %v231_v2 = vld [vmem:[%s1639_s1 + $0x40] sm:$0xff]  ;;  %v55_v4 = vld [vmem:[%s1638_s0 + $0x48] sm:$0xff] }
  0x12   :  { %889 = vmatprep.subr.bf16.mxu0 %v888_v27  ;;  %921 = vmatprep.subr.bf16.mxu1 %v888_v27  ;;  %v232_v5 = vld [vmem:[%s1639_s1 + $0x48] sm:$0xff]  ;;  %v56_v6 = vld [vmem:[%s1638_s0 + $0x50] sm:$0xff]  ;;  %v57_v8 = vld [vmem:[%s1638_s0 + $0x58] sm:$0xff] }
  0x13   :  { %v233_v7 = vld [vmem:[%s1639_s1 + $0x50] sm:$0xff]  ;;  %v234_v9 = vld [vmem:[%s1639_s1 + $0x58] sm:$0xff]  ;;  %v58_v10 = vld [vmem:[%s1638_s0 + $0x60] sm:$0xff] }
  0x14   :  { %v235_v11 = vld [vmem:[%s1639_s1 + $0x60] sm:$0xff]  ;;  %v59_v12 = vld [vmem:[%s1638_s0 + $0x68] sm:$0xff]  ;;  %v60_v14 = vld [vmem:[%s1638_s0 + $0x70] sm:$0xff] }
  0x15   :  { %891 = vmatpush1.bf16.msra.mxu0 %v890_v32  ;;  %923 = vmatpush1.bf16.msra.mxu1 %v890_v32  ;;  %v236_v13 = vld [vmem:[%s1639_s1 + $0x68] sm:$0xff]  ;;  %v237_v15 = vld [vmem:[%s1639_s1 + $0x70] sm:$0xff]  ;;  %v61_v16 = vld [vmem:[%s1638_s0 + $0x78] sm:$0xff] }
  0x16   :  { %893 = vmatprep.subr.bf16.mxu0 %v892_v33  ;;  %925 = vmatprep.subr.bf16.mxu1 %v892_v33  ;;  %v238_v17 = vld [vmem:[%s1639_s1 + $0x78] sm:$0xff] }
  0x19   :  { %895 = vmatpush1.bf16.msra.mxu0 %v894_v38  ;;  %927 = vmatpush1.bf16.msra.mxu1 %v894_v38 }
  0x1a   :  { %897 = vmatprep.subr.bf16.mxu0 %v896_v39  ;;  %929 = vmatprep.subr.bf16.mxu1 %v896_v39 }
  0x1d   :  { %899 = vmatpush1.bf16.msra.mxu0 %v898_v44  ;;  %931 = vmatpush1.bf16.msra.mxu1 %v898_v44 }
  0x1e   :  { %901 = vmatprep.subr.bf16.mxu0 %v900_v45  ;;  %933 = vmatprep.subr.bf16.mxu1 %v900_v45 }
  0x21   :  { %903 = vmatpush1.bf16.msra.mxu0 %v902_v48  ;;  %935 = vmatpush1.bf16.msra.mxu1 %v902_v48 }
  0x24   :  { %127 = vmatmul.mubr.f32.vlgmr.msra.gmra.mrb[0].mxu0 %v46_v49  ;;  %304 = vmatmul.mubr.f32.vlgmr.msra.gmra.mrb[0].mxu1 %v223_v50 }
  0x25   :  { %132 = vmatprep.mubr.f32.mxu0 %v1033_v3  ;;  %309 = vmatprep.mubr.f32.mxu1 %v1033_v3 }
  0x28   :  { %133 = vmatmul.mubr.f32.gmra.mrb[2].mxu0 %v47_v51  ;;  %310 = vmatmul.mubr.f32.gmra.mrb[2].mxu1 %v224_v52 }
  0x29   :  { %138 = vmatprep.mubr.f32.mxu0 %v1033_v3  ;;  %315 = vmatprep.mubr.f32.mxu1 %v1033_v3 }
  0x2c   :  { %139 = vmatmul.mubr.f32.gmra.mrb[4].mxu0 %v48_v53  ;;  %316 = vmatmul.mubr.f32.gmra.mrb[4].mxu1 %v225_v54 }
  0x2d   :  { %144 = vmatprep.mubr.f32.mxu0 %v1033_v3  ;;  %321 = vmatprep.mubr.f32.mxu1 %v1033_v3 }
  0x30   :  { %145 = vmatmul.mubr.f32.gmra.mrb[6].mxu0 %v49_v55  ;;  %322 = vmatmul.mubr.f32.gmra.mrb[6].mxu1 %v226_v56 }
  0x31   :  { %150 = vmatprep.mubr.f32.mxu0 %v1033_v3  ;;  %327 = vmatprep.mubr.f32.mxu1 %v1033_v3 }
  0x34   :  { %151 = vmatmul.mubr.f32.gmra.mrb[8].mxu0 %v50_v57  ;;  %328 = vmatmul.mubr.f32.gmra.mrb[8].mxu1 %v227_v58 }
  0x35   :  { %156 = vmatprep.mubr.f32.mxu0 %v1033_v3  ;;  %333 = vmatprep.mubr.f32.mxu1 %v1033_v3 }
  0x38   :  { %157 = vmatmul.mubr.f32.gmra.mrb[10].mxu0 %v51_v59  ;;  %334 = vmatmul.mubr.f32.gmra.mrb[10].mxu1 %v228_v60 }
  0x39   :  { %162 = vmatprep.mubr.f32.mxu0 %v1033_v3  ;;  %339 = vmatprep.mubr.f32.mxu1 %v1033_v3 }
  0x3c   :  { %163 = vmatmul.mubr.f32.gmra.mrb[12].mxu0 %v52_v61  ;;  %340 = vmatmul.mubr.f32.gmra.mrb[12].mxu1 %v229_v62 }
  0x3d   :  { %168 = vmatprep.mubr.f32.mxu0 %v1033_v3  ;;  %345 = vmatprep.mubr.f32.mxu1 %v1033_v3 }
  0x40   :  { %169 = vmatmul.mubr.f32.gmra.mrb[14].mxu0 %v53_v63  ;;  %346 = vmatmul.mubr.f32.gmra.mrb[14].mxu1 %v230_v0 }
  0x41   :  { %174 = vmatprep.mubr.f32.mxu0 %v1033_v3  ;;  %351 = vmatprep.mubr.f32.mxu1 %v1033_v3 }
  0x44   :  { %175 = vmatmul.mubr.f32.gmra.mrb[16].mxu0 %v54_v1  ;;  %352 = vmatmul.mubr.f32.gmra.mrb[16].mxu1 %v231_v2 }
  0x45   :  { %180 = vmatprep.mubr.f32.mxu0 %v1033_v3  ;;  %357 = vmatprep.mubr.f32.mxu1 %v1033_v3 }
  0x48   :  { %181 = vmatmul.mubr.f32.gmra.mrb[18].mxu0 %v55_v4  ;;  %358 = vmatmul.mubr.f32.gmra.mrb[18].mxu1 %v232_v5 }
  0x49   :  { %186 = vmatprep.mubr.f32.mxu0 %v1033_v3  ;;  %363 = vmatprep.mubr.f32.mxu1 %v1033_v3 }
  0x4c   :  { %187 = vmatmul.mubr.f32.gmra.mrb[20].mxu0 %v56_v6  ;;  %364 = vmatmul.mubr.f32.gmra.mrb[20].mxu1 %v233_v7 }
  0x4d   :  { %192 = vmatprep.mubr.f32.mxu0 %v1033_v3  ;;  %369 = vmatprep.mubr.f32.mxu1 %v1033_v3 }
  0x50   :  { %193 = vmatmul.mubr.f32.gmra.mrb[22].mxu0 %v57_v8  ;;  %370 = vmatmul.mubr.f32.gmra.mrb[22].mxu1 %v234_v9 }
  0x51   :  { %198 = vmatprep.mubr.f32.mxu0 %v1033_v3  ;;  %375 = vmatprep.mubr.f32.mxu1 %v1033_v3 }
  0x54   :  { %199 = vmatmul.mubr.f32.gmra.mrb[24].mxu0 %v58_v10  ;;  %376 = vmatmul.mubr.f32.gmra.mrb[24].mxu1 %v235_v11 }
  0x55   :  { %204 = vmatprep.mubr.f32.mxu0 %v1033_v3  ;;  %381 = vmatprep.mubr.f32.mxu1 %v1033_v3 }
  0x58   :  { %205 = vmatmul.mubr.f32.gmra.mrb[26].mxu0 %v59_v12  ;;  %382 = vmatmul.mubr.f32.gmra.mrb[26].mxu1 %v236_v13 }
  0x59   :  { %210 = vmatprep.mubr.f32.mxu0 %v1033_v3  ;;  %387 = vmatprep.mubr.f32.mxu1 %v1033_v3 }
  0x5c   :  { %211 = vmatmul.mubr.f32.gmra.mrb[28].mxu0 %v60_v14  ;;  %388 = vmatmul.mubr.f32.gmra.mrb[28].mxu1 %v237_v15 }
  0x5d   :  { %216 = vmatprep.mubr.f32.mxu0 %v1033_v3  ;;  %393 = vmatprep.mubr.f32.mxu1 %v1033_v3 }
  0x60   :  { %217 = vmatmul.mubr.f32.gmra.mrb[30].mxu0 %v61_v16  ;;  %394 = vmatmul.mubr.f32.gmra.mrb[30].mxu1 %v238_v17 }
  0xf7   :  { %v128_v18 = vpop.f32.mrb[0].mxu0  ;;  %v305_v19 = vpop.f32.mrb[0].mxu1 }
  0xf8   :  { %v400_v20 = vmul.f32 %v128_v18, %v128_v18  ;;  %v464_v21 = vmul.f32 %v305_v19, %v305_v19  ;;  %v130_v22 = vpop.f32.mrb[1].mxu0  ;;  %v307_v23 = vpop.f32.mrb[1].mxu1 }
  0xf9   :  { %v416_v24 = vmul.f32 %v130_v22, %v130_v22  ;;  %v480_v25 = vmul.f32 %v307_v23, %v307_v23 }
  0xfb   :  { %v432_v26 = vadd.f32 %v416_v24, %v400_v20  ;;  %v496_v3 = vadd.f32 %v480_v25, %v464_v21  ;;  %v134_v27 = vpop.f32.mrb[2].mxu0  ;;  %v311_v28 = vpop.f32.mrb[2].mxu1 }
  0xfc   :  { %v401_v29 = vmul.f32 %v134_v27, %v134_v27  ;;  %v465_v30 = vmul.f32 %v311_v28, %v311_v28  ;;  %v136_v31 = vpop.f32.mrb[3].mxu0  ;;  %v313_v32 = vpop.f32.mrb[3].mxu1 }
  0xfd   :  { %v448_v33 = vmax.f32 %v432_v26, 1e-07  ;;  %v512_v34 = vmax.f32 %v496_v3, 1e-07  ;;  %v417_v35 = vmul.f32 %v136_v31, %v136_v31  ;;  %v481_v36 = vmul.f32 %v313_v32, %v313_v32 }
  0xff   :  { %937 = vlog2.f32 %v448_v33  ;;  %v1278_v37 = vadd.f32 %v512_v34, %v448_v33  ;;  %v1280_v38 = vmul.f32 %v512_v34, %v448_v33  ;;  %v433_v39 = vadd.f32 %v417_v35, %v401_v29  ;;  %v140_v40 = vpop.f32.mrb[4].mxu0  ;;  %v317_v41 = vpop.f32.mrb[4].mxu1 }
 0x100   :  { %939 = vlog2.f32 %v512_v34  ;;  %v497_v42 = vadd.f32 %v481_v36, %v465_v30  ;;  %v142_v43 = vpop.f32.mrb[5].mxu0  ;;  %v319_v44 = vpop.f32.mrb[5].mxu1  ;;  %v402_v45 = vmul.f32 %v140_v40, %v140_v40  ;;  %v466_v46 = vmul.f32 %v317_v41, %v317_v41 }
 0x101   :  { %941 = vrsqrt.f32 %v1280_v38  ;;  %v449_v47 = vmax.f32 %v433_v39, 1e-07  ;;  %v418_v49 = vmul.f32 %v142_v43, %v142_v43  ;;  %v482_v50 = vmul.f32 %v319_v44, %v319_v44 }
 0x102   :  { %v513_v48 = vmax.f32 %v497_v42, 1e-07  ;;  %vm562_vm0 = vcmp.eq.f32.partialorder %v1280_v38, inf  ;;  %vm564_vm1 = vcmp.eq.f32.partialorder %v1280_v38, 0.0  ;;  %v565_v4 = vand.u32 2147483648, %v1280_v38 }
 0x103   :  { %v146_v51 = vpop.f32.mrb[6].mxu0  ;;  %v323_v52 = vpop.f32.mrb[6].mxu1  ;;  %943 = vlog2.f32 %v449_v47  ;;  %v434_v58 = vadd.f32 %v418_v49, %v402_v45  ;;  %v498_v59 = vadd.f32 %v482_v50, %v466_v46 }
 0x104   :  { %v1283_v53 = vadd.f32 %v513_v48, %v449_v47  ;;  %v1285_v54 = vmul.f32 %v513_v48, %v449_v47  ;;  %v832_v55 = vadd.f32 %v513_v48, %v512_v34  ;;  %v148_v56 = vpop.f32.mrb[7].mxu0  ;;  %v325_v57 = vpop.f32.mrb[7].mxu1  ;;  %945 = vlog2.f32 %v513_v48 }
 0x105   :  { %v403_v60 = vmul.f32 %v146_v51, %v146_v51  ;;  %v450_v61 = vmax.f32 %v434_v58, 1e-07  ;;  %v514_v62 = vmax.f32 %v498_v59, 1e-07  ;;  %v467_v63 = vmul.f32 %v323_v52, %v323_v52 }
 0x106   :  { %947 = vrsqrt.f32 %v1285_v54  ;;  %v419_v0 = vmul.f32 %v148_v56, %v148_v56  ;;  %v483_v5 = vmul.f32 %v325_v57, %v325_v57  ;;  %vm569_vm2 = vcmp.eq.f32.partialorder %v1285_v54, inf }
 0x107   :  { %v152_v1 = vpop.f32.mrb[8].mxu0  ;;  %v329_v2 = vpop.f32.mrb[8].mxu1  ;;  %949 = vlog2.f32 %v450_v61  ;;  %v1291_v9 = vadd.f32 %v514_v62, %v450_v61  ;;  %v1293_v10 = vmul.f32 %v514_v62, %v450_v61  ;;  %v833_v11 = vadd.f32 %v832_v55, %v514_v62 }
 0x108   :  { %v154_v6 = vpop.f32.mrb[9].mxu0  ;;  %v331_v7 = vpop.f32.mrb[9].mxu1  ;;  %951 = vlog2.f32 %v514_v62  ;;  %v435_v14 = vadd.f32 %v419_v0, %v403_v60  ;;  %v499_v15 = vadd.f32 %v483_v5, %v467_v63  ;;  %vm571_vm3 = vcmp.eq.f32.partialorder %v1285_v54, 0.0 }
 0x109   :  { %v938_v8 = vpop.eup %937  ;;  %v572_v18 = vand.u32 2147483648, %v1285_v54  ;;  %953 = vrsqrt.f32 %v1293_v10  ;;  %v404_v24 = vmul.f32 %v152_v1, %v152_v1  ;;  %v468_v3 = vmul.f32 %v329_v2, %v329_v2 }
 0x10a   :  { %v940_v12 = vpop.eup %939  ;;  %v737_v13 = vmul.f32 0.6931472, %v938_v8  ;;  %v451_v22 = vmax.f32 %v435_v14, 1e-07  ;;  %v515_v23 = vmax.f32 %v499_v15, 1e-07  ;;  %v420_v27 = vmul.f32 %v154_v6, %v154_v6 }
 0x10b   :  { %v942_v16 = vpop.eup %941  ;;  %v705_v17 = vmul.f32 0.6931472, %v940_v12  ;;  %v158_v19 = vpop.f32.mrb[10].mxu0  ;;  %v484_v28 = vmul.f32 %v331_v7, %v331_v7  ;;  %vm576_vm4 = vcmp.eq.f32.partialorder %v1293_v10, inf  ;;  %vm578_vm5 = vcmp.eq.f32.partialorder %v1293_v10, 0.0 }
 0x10c   :  { %v335_v20 = vpop.f32.mrb[10].mxu1  ;;  %v561_v21 = vmul.f32 %v942_v16, %v1280_v38  ;;  %v160_v25 = vpop.f32.mrb[11].mxu0  ;;  %955 = vlog2.f32 %v451_v22  ;;  %v1303_v32 = vadd.f32 %v515_v23, %v451_v22  ;;  %v1305_v33 = vmul.f32 %v515_v23, %v451_v22 }
 0x10d   :  { %v768_v26 = vsub.f32 %v705_v17, %v737_v13  ;;  %v337_v29 = vpop.f32.mrb[11].mxu1  ;;  %v944_v30 = vpop.eup %943  ;;  %957 = vlog2.f32 %v515_v23  ;;  %v579_v48 = vand.u32 2147483648, %v1293_v10  ;;  %v405_v49 = vmul.f32 %v158_v19, %v158_v19 }
 0x10e   :  { %v563_v31 = vsel %vm562_vm0, %v1280_v38, %v561_v21  ;;  %v946_v34 = vpop.eup %945  ;;  %v739_v39 = vmul.f32 0.6931472, %v944_v30  ;;  %959 = vrsqrt.f32 %v1305_v33  ;;  %v834_v52 = vadd.f32 %v833_v11, %v515_v23 }
 0x10f   :  { %v566_v35 = vsel %vm564_vm1, %v565_v4, %v563_v31  ;;  %v784_v36 = vand.u32 2147483647, %v768_v26  ;;  %v1310_v40 = vpop.f32.mrb[12].mxu0  ;;  %v1312_v41 = vpop.f32.mrb[12].mxu1  ;;  %v707_v44 = vmul.f32 0.6931472, %v946_v34  ;;  %v436_v55 = vadd.f32 %v420_v27, %v404_v24 }
 0x110   :  { %v948_v42 = vpop.eup %947  ;;  %v672_v43 = vmul.f32 2.0, %v566_v35  ;;  %v1316_v45 = vpop.f32.mrb[13].mxu0  ;;  %v500_v58 = vadd.f32 %v484_v28, %v468_v3  ;;  %v469_v59 = vmul.f32 %v335_v20, %v335_v20  ;;  %v421_v60 = vmul.f32 %v160_v25, %v160_v25 }
 0x111   :  { %v1318_v38 = vpop.f32.mrb[13].mxu1  ;;  %v800_v46 = vmul.f32 0.5, %v784_v36  ;;  %v568_v47 = vmul.f32 %v948_v42, %v1285_v54  ;;  %v769_v51 = vsub.f32 %v707_v44, %v739_v39  ;;  %v950_v56 = vpop.eup %949  ;;  %v452_v2 = vmax.f32 %v436_v55, 1e-07 }
 0x112   :  { %v688_v50 = vsub.f32 %v1278_v37, %v672_v43  ;;  %v952_v63 = vpop.eup %951  ;;  %v741_v1 = vmul.f32 0.6931472, %v950_v56  ;;  %v516_v7 = vmax.f32 %v500_v58, 1e-07  ;;  %v437_v8 = vadd.f32 %v421_v60, %v405_v49 }
 0x113   :  { %v570_v57 = vsel %vm569_vm2, %v1285_v54, %v568_v47  ;;  %v1326_v61 = vpop.f32.mrb[14].mxu0  ;;  %v1328_v62 = vpop.f32.mrb[14].mxu1  ;;  %v785_v37 = vand.u32 2147483647, %v769_v51  ;;  %v709_v6 = vmul.f32 0.6931472, %v952_v63  ;;  %961 = vlog2.f32 %v452_v2 }
 0x114   :  { %v573_v0 = vsel %vm571_vm3, %v572_v18, %v570_v57  ;;  %v954_v4 = vpop.eup %953  ;;  %v172_v11 = vpop.f32.mrb[15].mxu0  ;;  %v485_v14 = vmul.f32 %v337_v29, %v337_v29  ;;  %v1336_v17 = vadd.f32 %v516_v7, %v452_v2  ;;  %v1338_v18 = vmul.f32 %v516_v7, %v452_v2 }
 0x115   :  { %v673_v5 = vmul.f32 2.0, %v573_v0  ;;  %v801_v12 = vmul.f32 0.5, %v785_v37  ;;  %v575_v13 = vmul.f32 %v954_v4, %v1293_v10  ;;  %v1333_v15 = vpop.f32.mrb[15].mxu1  ;;  %v770_v54 = vsub.f32 %v709_v6, %v741_v1 }
 0x116   :  { %v956_v21 = vpop.eup %955  ;;  %963 = vlog2.f32 %v516_v7  ;;  %v835_v24 = vadd.f32 %v834_v52, %v516_v7  ;;  %vm583_vm6 = vcmp.eq.f32.partialorder %v1305_v33, inf  ;;  %v586_v39 = vand.u32 2147483648, %v1305_v33 }
 0x117   :  { %v689_v16 = vsub.f32 %v1283_v53, %v673_v5  ;;  %v1340_v19 = vpop.f32.mrb[16].mxu0  ;;  %v1342_v20 = vpop.f32.mrb[16].mxu1  ;;  %v849_v22 = vadd.f32 %v801_v12, %v800_v46  ;;  %v577_v23 = vsel %vm576_vm4, %v1293_v10, %v575_v13  ;;  %v786_v28 = vand.u32 2147483647, %v770_v54 }
 0x118   :  { %v1347_v25 = vpop.f32.mrb[17].mxu0  ;;  %v1349_v53 = vpop.f32.mrb[17].mxu1  ;;  %v580_v27 = vsel %vm578_vm5, %v579_v48, %v577_v23  ;;  %v743_v29 = vmul.f32 0.6931472, %v956_v21  ;;  %965 = vrsqrt.f32 %v1338_v18  ;;  %v453_v46 = vmax.f32 %v437_v8, 1e-07 }
 0x119   :  { %v958_v26 = vpop.eup %957  ;;  %v816_v3 = vadd.f32 %v689_v16, %v688_v50  ;;  %v674_v31 = vmul.f32 2.0, %v580_v27  ;;  %v802_v35 = vmul.f32 0.5, %v786_v28  ;;  %v501_v47 = vadd.f32 %v485_v14, %v469_v59 }
 0x11a   :  { %v960_v30 = vpop.eup %959  ;;  %v711_v34 = vmul.f32 0.6931472, %v958_v26  ;;  %vm585_vm7 = vcmp.eq.f32.partialorder %v1305_v33, 0.0  ;;  %v406_v52 = vmul.f32 %v1310_v40, %v1310_v40  ;;  %967 = vlog2.f32 %v453_v46 }
 0x11b   :  { %v582_v36 = vmul.f32 %v960_v30, %v1305_v33  ;;  %v1357_v42 = vpop.f32.mrb[18].mxu0  ;;  %v1359_v43 = vpop.f32.mrb[18].mxu1  ;;  %v690_v10 = vsub.f32 %v1291_v9, %v674_v31  ;;  %v850_v50 = vadd.f32 %v849_v22, %v802_v35  ;;  %v517_v58 = vmax.f32 %v501_v47, 1e-07 }
 0x11c   :  { %v771_v44 = vsub.f32 %v711_v34, %v743_v29  ;;  %v1362_v48 = vpop.f32.mrb[19].mxu0  ;;  %v1364_v49 = vpop.f32.mrb[19].mxu1  ;;  %v470_v59 = vmul.f32 %v1312_v41, %v1312_v41  ;;  %v422_v60 = vmul.f32 %v1316_v45, %v1316_v45  ;;  %v486_v40 = vmul.f32 %v1318_v38, %v1318_v38 }
 0x11d   :  { %v584_v51 = vsel %vm583_vm6, %v1305_v33, %v582_v36  ;;  %v817_v55 = vadd.f32 %v816_v3, %v690_v10  ;;  %v962_v33 = vpop.eup %961  ;;  %v407_v1 = vmul.f32 %v1326_v61, %v1326_v61  ;;  %v423_v2 = vmul.f32 %v172_v11, %v172_v11 }
 0x11e   :  { %v587_v56 = vsel %vm585_vm7, %v586_v39, %v584_v51  ;;  %v787_v57 = vand.u32 2147483647, %v771_v44  ;;  %v745_v45 = vmul.f32 0.6931472, %v962_v33  ;;  %v1387_v6 = vadd.f32 %v517_v58, %v453_v46 }
 0x11f   :  { %v675_v9 = vmul.f32 2.0, %v587_v56  ;;  %v1374_v63 = vpop.f32.mrb[20].mxu0  ;;  %v1376_v0 = vpop.f32.mrb[20].mxu1  ;;  %v1389_v7 = vmul.f32 %v517_v58, %v453_v46  ;;  %969 = vlog2.f32 %v517_v58  ;;  %v836_v13 = vadd.f32 %v835_v24, %v517_v58 }
 0x120   :  { %v803_v37 = vmul.f32 0.5, %v787_v57  ;;  %v1382_v4 = vpop.f32.mrb[21].mxu0  ;;  %v1384_v5 = vpop.f32.mrb[21].mxu1  ;;  %v438_v38 = vadd.f32 %v422_v60, %v406_v52  ;;  %v471_v61 = vmul.f32 %v1328_v62, %v1328_v62  ;;  %vm590_vm8 = vcmp.eq.f32.partialorder %v1338_v18, inf }
 0x121   :  { %v691_v41 = vsub.f32 %v1303_v32, %v675_v9  ;;  %v964_v8 = vpop.eup %963  ;;  %971 = vrsqrt.f32 %v1389_v7  ;;  %v502_v22 = vadd.f32 %v486_v40, %v470_v59  ;;  %v439_v27 = vadd.f32 %v423_v2, %v407_v1 }
 0x122   :  { %v851_v12 = vadd.f32 %v850_v50, %v803_v37  ;;  %v713_v16 = vmul.f32 0.6931472, %v964_v8  ;;  %v966_v54 = vpop.eup %965  ;;  %v454_v21 = vmax.f32 %v438_v38, 1e-07  ;;  %v487_v62 = vmul.f32 %v1333_v15, %v1333_v15 }
 0x123   :  { %v818_v14 = vadd.f32 %v817_v55, %v691_v41  ;;  %v1394_v11 = vpop.f32.mrb[22].mxu0  ;;  %v1396_v32 = vpop.f32.mrb[22].mxu1  ;;  %v589_v26 = vmul.f32 %v966_v54, %v1338_v18  ;;  %vm592_vm9 = vcmp.eq.f32.partialorder %v1338_v18, 0.0  ;;  %v593_v28 = vand.u32 2147483648, %v1338_v18 }
 0x124   :  { %v1399_v23 = vpop.f32.mrb[23].mxu0  ;;  %v1401_v24 = vpop.f32.mrb[23].mxu1  ;;  %v772_v3 = vsub.f32 %v713_v16, %v745_v45  ;;  %973 = vlog2.f32 %v454_v21  ;;  %v518_v29 = vmax.f32 %v502_v22, 1e-07  ;;  %v455_v34 = vmax.f32 %v439_v27, 1e-07 }
 0x125   :  { %v591_v30 = vsel %vm590_vm8, %v1338_v18, %v589_v26  ;;  %v503_v35 = vadd.f32 %v487_v62, %v471_v61  ;;  %v968_v10 = vpop.eup %967  ;;  %vm597_vm10 = vcmp.eq.f32.partialorder %v1389_v7, inf  ;;  %vm599_vm11 = vcmp.eq.f32.partialorder %v1389_v7, 0.0 }
 0x126   :  { %v788_v31 = vand.u32 2147483647, %v772_v3  ;;  %v594_v44 = vsel %vm592_vm9, %v593_v28, %v591_v30  ;;  %v1413_v46 = vadd.f32 %v518_v29, %v454_v21  ;;  %v1415_v15 = vmul.f32 %v518_v29, %v454_v21 }
 0x127   :  { %v1409_v36 = vpop.f32.mrb[24].mxu0  ;;  %v1411_v39 = vpop.f32.mrb[24].mxu1  ;;  %975 = vlog2.f32 %v518_v29  ;;  %v676_v51 = vmul.f32 2.0, %v594_v44  ;;  %v837_v52 = vadd.f32 %v836_v13, %v518_v29  ;;  %v747_v55 = vmul.f32 0.6931472, %v968_v10 }
 0x128   :  { %v1417_v47 = vpop.f32.mrb[25].mxu0  ;;  %v1419_v50 = vpop.f32.mrb[25].mxu1  ;;  %v804_v18 = vmul.f32 0.5, %v788_v31  ;;  %977 = vrsqrt.f32 %v1415_v15  ;;  %v408_v56 = vmul.f32 %v1340_v19, %v1340_v19  ;;  %v519_v58 = vmax.f32 %v503_v35, 1e-07 }
 0x129   :  { %v692_v57 = vsub.f32 %v1336_v17, %v676_v51  ;;  %979 = vlog2.f32 %v455_v34  ;;  %v970_v33 = vpop.eup %969  ;;  %v600_v37 = vand.u32 2147483648, %v1389_v7  ;;  %v472_v40 = vmul.f32 %v1342_v20, %v1342_v20 }
 0x12a   :  { %v852_v9 = vadd.f32 %v851_v12, %v804_v18  ;;  %v424_v1 = vmul.f32 %v1347_v25, %v1347_v25  ;;  %v488_v19 = vmul.f32 %v1349_v53, %v1349_v53  ;;  %v715_v8 = vmul.f32 0.6931472, %v970_v33 }
 0x12b   :  { %v1427_v59 = vpop.f32.mrb[26].mxu0  ;;  %v1429_v60 = vpop.f32.mrb[26].mxu1  ;;  %v819_v45 = vadd.f32 %v818_v14, %v692_v57  ;;  %v1442_v12 = vadd.f32 %v519_v58, %v455_v34  ;;  %v1444_v13 = vmul.f32 %v519_v58, %v455_v34  ;;  %vm604_vm12 = vcmp.eq.f32.partialorder %v1415_v15, inf }
 0x12c   :  { %v1438_v17 = vpop.f32.mrb[27].mxu0  ;;  %v1440_v2 = vpop.f32.mrb[27].mxu1  ;;  %981 = vlog2.f32 %v519_v58  ;;  %v838_v20 = vadd.f32 %v837_v52, %v519_v58  ;;  %v440_v25 = vadd.f32 %v424_v1, %v408_v56  ;;  %v773_v16 = vsub.f32 %v715_v8, %v747_v55 }
 0x12d   :  { %v972_v41 = vpop.eup %971  ;;  %vm606_vm13 = vcmp.eq.f32.partialorder %v1415_v15, 0.0  ;;  %983 = vrsqrt.f32 %v1444_v13  ;;  %v409_v53 = vmul.f32 %v1357_v42, %v1357_v42  ;;  %v607_v22 = vand.u32 2147483648, %v1415_v15 }
 0x12e   :  { %v596_v38 = vmul.f32 %v972_v41, %v1389_v7  ;;  %v974_v54 = vpop.eup %973  ;;  %v456_v26 = vmax.f32 %v440_v25, 1e-07  ;;  %v504_v3 = vadd.f32 %v488_v19, %v472_v40  ;;  %v789_v28 = vand.u32 2147483647, %v773_v16 }
 0x12f   :  { %v1452_v14 = vpop.f32.mrb[28].mxu0  ;;  %v1454_v61 = vpop.f32.mrb[28].mxu1  ;;  %v749_v29 = vmul.f32 0.6931472, %v974_v54  ;;  %v425_v30 = vmul.f32 %v1362_v48, %v1362_v48  ;;  %v473_v10 = vmul.f32 %v1359_v43, %v1359_v43  ;;  %vm611_vm14 = vcmp.eq.f32.partialorder %v1444_v13, inf }
 0x130   :  { %v598_v21 = vsel %vm597_vm10, %v1389_v7, %v596_v38  ;;  %v1460_v27 = vpop.f32.mrb[29].mxu0  ;;  %v1462_v62 = vpop.f32.mrb[29].mxu1  ;;  %985 = vlog2.f32 %v456_v26  ;;  %v520_v35 = vmax.f32 %v504_v3, 1e-07  ;;  %v805_v44 = vmul.f32 0.5, %v789_v28 }
 0x131   :  { %v601_v42 = vsel %vm599_vm11, %v600_v37, %v598_v21  ;;  %v976_v31 = vpop.eup %975  ;;  %v441_v18 = vadd.f32 %v425_v30, %v409_v53  ;;  %v489_v7 = vmul.f32 %v1364_v49, %v1364_v49  ;;  %vm613_vm15 = vcmp.eq.f32.partialorder %v1444_v13, 0.0 }
 0x132   :  { %v677_v34 = vmul.f32 2.0, %v601_v42  ;;  %v717_v51 = vmul.f32 0.6931472, %v976_v31  ;;  %v978_v48 = vpop.eup %977  ;;  %v1478_v57 = vadd.f32 %v520_v35, %v456_v26  ;;  %v1480_v58 = vmul.f32 %v520_v35, %v456_v26 }
 0x133   :  { %v1473_v52 = vpop.f32.mrb[30].mxu0  ;;  %v1475_v55 = vpop.f32.mrb[30].mxu1  ;;  %987 = vlog2.f32 %v520_v35  ;;  %v853_v40 = vadd.f32 %v852_v9, %v805_v44  ;;  %v603_v49 = vmul.f32 %v978_v48, %v1415_v15  ;;  %v839_v19 = vadd.f32 %v838_v20, %v520_v35 }
 0x134   :  { %v693_v56 = vsub.f32 %v1387_v6, %v677_v34  ;;  %v1482_v43 = vpop.f32.mrb[31].mxu0  ;;  %v1484_v33 = vpop.f32.mrb[31].mxu1  ;;  %v774_v1 = vsub.f32 %v717_v51, %v749_v29  ;;  %v614_v6 = vand.u32 2147483648, %v1444_v13  ;;  %989 = vrsqrt.f32 %v1480_v58 }
 0x135   :  { %v980_v37 = vpop.eup %979  ;;  %v605_v8 = vsel %vm604_vm12, %v1415_v15, %v603_v49  ;;  %v410_v9 = vmul.f32 %v1374_v63, %v1374_v63  ;;  %v505_v53 = vadd.f32 %v489_v7, %v473_v10  ;;  %v474_v54 = vmul.f32 %v1376_v0, %v1376_v0 }
 0x136   :  { %v820_v41 = vadd.f32 %v819_v45, %v693_v56  ;;  %v790_v38 = vand.u32 2147483647, %v774_v1  ;;  %v751_v25 = vmul.f32 0.6931472, %v980_v37  ;;  %v982_v16 = vpop.eup %981  ;;  %v608_v20 = vsel %vm606_vm13, %v607_v22, %v605_v8 }
 0x137   :  { %v457_v45 = vmax.f32 %v441_v18, 1e-07  ;;  %v984_v21 = vpop.eup %983  ;;  %v678_v26 = vmul.f32 2.0, %v608_v20  ;;  %v719_v42 = vmul.f32 0.6931472, %v982_v16  ;;  %v426_v28 = vmul.f32 %v1382_v4, %v1382_v4 }
 0x138   :  { %v806_v3 = vmul.f32 0.5, %v790_v38  ;;  %v610_v29 = vmul.f32 %v984_v21, %v1444_v13  ;;  %v521_v63 = vmax.f32 %v505_v53, 1e-07  ;;  %v490_v15 = vmul.f32 %v1384_v5, %v1384_v5 }
 0x139   :  { %991 = vlog2.f32 %v457_v45  ;;  %v694_v22 = vsub.f32 %v1413_v46, %v678_v26  ;;  %v775_v31 = vsub.f32 %v719_v42, %v751_v25  ;;  %v442_v34 = vadd.f32 %v426_v28, %v410_v9 }
 0x13a   :  { %v854_v30 = vadd.f32 %v853_v40, %v806_v3  ;;  %v986_v0 = vpop.eup %985  ;;  %v612_v35 = vsel %vm611_vm14, %v1444_v13, %v610_v29  ;;  %v1508_v10 = vadd.f32 %v521_v63, %v457_v45  ;;  %v1510_v4 = vmul.f32 %v521_v63, %v457_v45 }
 0x13b   :  { %993 = vlog2.f32 %v521_v63  ;;  %v821_v44 = vadd.f32 %v820_v41, %v694_v22  ;;  %v615_v51 = vsel %vm613_vm15, %v614_v6, %v612_v35  ;;  %v791_v5 = vand.u32 2147483647, %v775_v31 }
 0x13c   :  { %v753_v18 = vmul.f32 0.6931472, %v986_v0  ;;  %v679_v7 = vmul.f32 2.0, %v615_v51  ;;  %vm618_vm0 = vcmp.eq.f32.partialorder %v1480_v58, inf  ;;  %995 = vrsqrt.f32 %v1510_v4 }
 0x13d   :  { %v988_v46 = vpop.eup %987  ;;  %v807_v48 = vmul.f32 0.5, %v791_v5  ;;  %vm620_vm1 = vcmp.eq.f32.partialorder %v1480_v58, 0.0  ;;  %v840_v37 = vadd.f32 %v839_v19, %v521_v63  ;;  %v621_v1 = vand.u32 2147483648, %v1480_v58 }
 0x13e   :  { %v721_v56 = vmul.f32 0.6931472, %v988_v46  ;;  %v990_v40 = vpop.eup %989  ;;  %v695_v49 = vsub.f32 %v1442_v12, %v679_v7  ;;  %v458_v13 = vmax.f32 %v442_v34, 1e-07  ;;  %v506_v41 = vadd.f32 %v490_v15, %v474_v54 }
 0x13f   :  { %v855_v6 = vadd.f32 %v854_v30, %v807_v48  ;;  %v617_v8 = vmul.f32 %v990_v40, %v1480_v58  ;;  %v411_v25 = vmul.f32 %v1394_v11, %v1394_v11  ;;  %v475_v19 = vmul.f32 %v1396_v32, %v1396_v32 }
 0x140   :  { %v776_v38 = vsub.f32 %v721_v56, %v753_v18  ;;  %v822_v9 = vadd.f32 %v821_v44, %v695_v49  ;;  %997 = vlog2.f32 %v458_v13  ;;  %v522_v16 = vmax.f32 %v506_v41, 1e-07 }
 0x141   :  { %v619_v12 = vsel %vm618_vm0, %v1480_v58, %v617_v8  ;;  %v427_v45 = vmul.f32 %v1399_v23, %v1399_v23  ;;  %v491_v53 = vmul.f32 %v1401_v24, %v1401_v24  ;;  %vm625_vm2 = vcmp.eq.f32.partialorder %v1510_v4, inf }
 0x142   :  { %v792_v20 = vand.u32 2147483647, %v776_v38  ;;  %v622_v11 = vsel %vm620_vm1, %v621_v1, %v619_v12  ;;  %v1533_v21 = vadd.f32 %v522_v16, %v458_v13  ;;  %v1535_v26 = vmul.f32 %v522_v16, %v458_v13 }
 0x143   :  { %v992_v54 = vpop.eup %991  ;;  %999 = vlog2.f32 %v522_v16  ;;  %v680_v32 = vmul.f32 2.0, %v622_v11  ;;  %v841_v28 = vadd.f32 %v840_v37, %v522_v16  ;;  %vm627_vm3 = vcmp.eq.f32.partialorder %v1510_v4, 0.0 }
 0x144   :  { %v808_v3 = vmul.f32 0.5, %v792_v20  ;;  %v755_v42 = vmul.f32 0.6931472, %v992_v54  ;;  %1001 = vrsqrt.f32 %v1535_v26  ;;  %v412_v23 = vmul.f32 %v1409_v36, %v1409_v36 }
 0x145   :  { %v994_v29 = vpop.eup %993  ;;  %v696_v24 = vsub.f32 %v1478_v57, %v680_v32  ;;  %v443_v15 = vadd.f32 %v427_v45, %v411_v25  ;;  %v507_v30 = vadd.f32 %v491_v53, %v475_v19  ;;  %v476_v31 = vmul.f32 %v1411_v39, %v1411_v39 }
 0x146   :  { %v856_v58 = vadd.f32 %v855_v6, %v808_v3  ;;  %v723_v63 = vmul.f32 0.6931472, %v994_v29  ;;  %v996_v22 = vpop.eup %995  ;;  %v428_v34 = vmul.f32 %v1417_v47, %v1417_v47  ;;  %v492_v0 = vmul.f32 %v1419_v50, %v1419_v50 }
 0x147   :  { %v823_v35 = vadd.f32 %v822_v9, %v696_v24  ;;  %v624_v44 = vmul.f32 %v996_v22, %v1510_v4  ;;  %v459_v51 = vmax.f32 %v443_v15, 1e-07  ;;  %v628_v57 = vand.u32 2147483648, %v1510_v4 }
 0x148   :  { %v777_v36 = vsub.f32 %v723_v63, %v755_v42  ;;  %v523_v5 = vmax.f32 %v507_v30, 1e-07  ;;  %v444_v18 = vadd.f32 %v428_v34, %v412_v23  ;;  %v508_v46 = vadd.f32 %v492_v0, %v476_v31 }
 0x149   :  { %v626_v39 = vsel %vm625_vm2, %v1510_v4, %v624_v44  ;;  %vm632_vm4 = vcmp.eq.f32.partialorder %v1535_v26, inf  ;;  %1003 = vlog2.f32 %v459_v51  ;;  %vm634_vm5 = vcmp.eq.f32.partialorder %v1535_v26, 0.0 }
 0x14a   :  { %v793_v7 = vand.u32 2147483647, %v777_v36  ;;  %v998_v47 = vpop.eup %997  ;;  %v629_v50 = vsel %vm627_vm3, %v628_v57, %v626_v39  ;;  %v1557_v48 = vadd.f32 %v523_v5, %v459_v51  ;;  %v1559_v56 = vmul.f32 %v523_v5, %v459_v51 }
 0x14b   :  { %1005 = vlog2.f32 %v523_v5  ;;  %v681_v37 = vmul.f32 2.0, %v629_v50  ;;  %v757_v49 = vmul.f32 0.6931472, %v998_v47  ;;  %v842_v1 = vadd.f32 %v841_v28, %v523_v5 }
 0x14c   :  { %v809_v40 = vmul.f32 0.5, %v793_v7  ;;  %1007 = vrsqrt.f32 %v1559_v56  ;;  %v413_v41 = vmul.f32 %v1427_v59, %v1427_v59  ;;  %v477_v4 = vmul.f32 %v1429_v60, %v1429_v60 }
 0x14d   :  { %v1000_v13 = vpop.eup %999  ;;  %v697_v6 = vsub.f32 %v1508_v10, %v681_v37  ;;  %v460_v25 = vmax.f32 %v444_v18, 1e-07  ;;  %v635_v16 = vand.u32 2147483648, %v1535_v26  ;;  %v524_v19 = vmax.f32 %v508_v46, 1e-07 }
 0x14e   :  { %v857_v8 = vadd.f32 %v856_v58, %v809_v40  ;;  %v725_v38 = vmul.f32 0.6931472, %v1000_v13  ;;  %v1002_v9 = vpop.eup %1001  ;;  %v429_v12 = vmul.f32 %v1438_v17, %v1438_v17  ;;  %v493_v20 = vmul.f32 %v1440_v2, %v1440_v2 }
 0x14f   :  { %v824_v45 = vadd.f32 %v823_v35, %v697_v6  ;;  %v631_v59 = vmul.f32 %v1002_v9, %v1535_v26  ;;  %1009 = vlog2.f32 %v460_v25  ;;  %v1574_v60 = vadd.f32 %v524_v19, %v460_v25 }
 0x150   :  { %v778_v53 = vsub.f32 %v725_v38, %v757_v49  ;;  %v1576_v10 = vmul.f32 %v524_v19, %v460_v25  ;;  %1011 = vlog2.f32 %v524_v19  ;;  %v843_v54 = vadd.f32 %v842_v1, %v524_v19 }
 0x151   :  { %v633_v11 = vsel %vm632_vm4, %v1535_v26, %v631_v59  ;;  %v445_v17 = vadd.f32 %v429_v12, %v413_v41  ;;  %v509_v3 = vadd.f32 %v493_v20, %v477_v4  ;;  %v414_v24 = vmul.f32 %v1452_v14, %v1452_v14 }
 0x152   :  { %v794_v32 = vand.u32 2147483647, %v778_v53  ;;  %v636_v2 = vsel %vm634_vm5, %v635_v16, %v633_v11  ;;  %1013 = vrsqrt.f32 %v1576_v10  ;;  %vm639_vm6 = vcmp.eq.f32.partialorder %v1559_v56, inf }
 0x153   :  { %v1004_v42 = vpop.eup %1003  ;;  %v682_v28 = vmul.f32 2.0, %v636_v2  ;;  %v461_v23 = vmax.f32 %v445_v17, 1e-07  ;;  %v525_v15 = vmax.f32 %v509_v3, 1e-07  ;;  %v430_v22 = vmul.f32 %v1460_v27, %v1460_v27 }
 0x154   :  { %v810_v29 = vmul.f32 0.5, %v794_v32  ;;  %v759_v63 = vmul.f32 0.6931472, %v1004_v42  ;;  %vm641_vm7 = vcmp.eq.f32.partialorder %v1559_v56, 0.0  ;;  %v642_v27 = vand.u32 2147483648, %v1559_v56 }
 0x155   :  { %v1006_v58 = vpop.eup %1005  ;;  %v698_v26 = vsub.f32 %v1533_v21, %v682_v28  ;;  %1015 = vlog2.f32 %v461_v23  ;;  %v1590_v0 = vadd.f32 %v525_v15, %v461_v23  ;;  %v1592_v35 = vmul.f32 %v525_v15, %v461_v23 }
 0x156   :  { %v858_v30 = vadd.f32 %v857_v8, %v810_v29  ;;  %v727_v31 = vmul.f32 0.6931472, %v1006_v58  ;;  %v1008_v34 = vpop.eup %1007  ;;  %1017 = vlog2.f32 %v525_v15  ;;  %v844_v14 = vadd.f32 %v843_v54, %v525_v15 }
 0x157   :  { %v825_v44 = vadd.f32 %v824_v45, %v698_v26  ;;  %v638_v36 = vmul.f32 %v1008_v34, %v1559_v56  ;;  %v446_v57 = vadd.f32 %v430_v22, %v414_v24  ;;  %1019 = vrsqrt.f32 %v1592_v35 }
 0x158   :  { %v779_v51 = vsub.f32 %v727_v31, %v759_v63  ;;  %v478_v21 = vmul.f32 %v1454_v61, %v1454_v61  ;;  %v494_v7 = vmul.f32 %v1462_v62, %v1462_v62  ;;  %v415_v40 = vmul.f32 %v1473_v52, %v1473_v52 }
 0x159   :  { %v1010_v5 = vpop.eup %1009  ;;  %v640_v18 = vsel %vm639_vm6, %v1559_v56, %v638_v36  ;;  %v462_v39 = vmax.f32 %v446_v57, 1e-07  ;;  %v479_v49 = vmul.f32 %v1475_v55, %v1475_v55  ;;  %vm646_vm8 = vcmp.eq.f32.partialorder %v1576_v10, inf }
 0x15a   :  { %v795_v46 = vand.u32 2147483647, %v779_v51  ;;  %v1012_v47 = vpop.eup %1011  ;;  %v643_v50 = vsel %vm641_vm7, %v642_v27, %v640_v18  ;;  %v761_v37 = vmul.f32 0.6931472, %v1010_v5  ;;  %v510_v41 = vadd.f32 %v494_v7, %v478_v21 }
 0x15b   :  { %v683_v61 = vmul.f32 2.0, %v643_v50  ;;  %v729_v13 = vmul.f32 0.6931472, %v1012_v47  ;;  %1021 = vlog2.f32 %v462_v39  ;;  %v431_v62 = vmul.f32 %v1482_v43, %v1482_v43 }
 0x15c   :  { %v811_v1 = vmul.f32 0.5, %v795_v46  ;;  %v1014_v56 = vpop.eup %1013  ;;  %v495_v4 = vmul.f32 %v1484_v33, %v1484_v33  ;;  %v649_v38 = vand.u32 2147483648, %v1576_v10  ;;  %v526_v25 = vmax.f32 %v510_v41, 1e-07 }
 0x15d   :  { %v699_v6 = vsub.f32 %v1557_v48, %v683_v61  ;;  %v645_v8 = vmul.f32 %v1014_v56, %v1576_v10  ;;  %v780_v55 = vsub.f32 %v729_v13, %v761_v37  ;;  %v447_v9 = vadd.f32 %v431_v62, %v415_v40 }
 0x15e   :  { %v859_v52 = vadd.f32 %v858_v30, %v811_v1  ;;  %v511_v16 = vadd.f32 %v495_v4, %v479_v49  ;;  %vm648_vm9 = vcmp.eq.f32.partialorder %v1576_v10, 0.0  ;;  %v542_v59 = vadd.f32 %v526_v25, %v462_v39 }
 0x15f   :  { %v1016_v19 = vpop.eup %1015  ;;  %v826_v12 = vadd.f32 %v825_v44, %v699_v6  ;;  %v647_v43 = vsel %vm646_vm8, %v1576_v10, %v645_v8  ;;  %v796_v33 = vand.u32 2147483647, %v780_v55  ;;  %v558_v53 = vmul.f32 %v526_v25, %v462_v39 }
 0x160   :  { %v1018_v20 = vpop.eup %1017  ;;  %v650_v48 = vsel %vm648_vm9, %v649_v38, %v647_v43  ;;  %v763_v45 = vmul.f32 0.6931472, %v1016_v19  ;;  %1023 = vlog2.f32 %v526_v25  ;;  %vm653_vm10 = vcmp.eq.f32.partialorder %v1592_v35, inf }
 0x161   :  { %v684_v54 = vmul.f32 2.0, %v650_v48  ;;  %v812_v11 = vmul.f32 0.5, %v796_v33  ;;  %v731_v32 = vmul.f32 0.6931472, %v1018_v20  ;;  %v1020_v17 = vpop.eup %1019  ;;  %1025 = vrsqrt.f32 %v558_v53 }
 0x162   :  { %v652_v42 = vmul.f32 %v1020_v17, %v1592_v35  ;;  %v656_v28 = vand.u32 2147483648, %v1592_v35  ;;  %v845_v29 = vadd.f32 %v844_v14, %v526_v25  ;;  %v463_v23 = vmax.f32 %v447_v9, 1e-07 }
 0x163   :  { %v700_v3 = vsub.f32 %v1574_v60, %v684_v54  ;;  %v860_v2 = vadd.f32 %v859_v52, %v812_v11  ;;  %v781_v10 = vsub.f32 %v731_v32, %v763_v45  ;;  %v527_v24 = vmax.f32 %v511_v16, 1e-07 }
 0x164   :  { %v654_v63 = vsel %vm653_vm10, %v1592_v35, %v652_v42  ;;  %vm655_vm11 = vcmp.eq.f32.partialorder %v1592_v35, 0.0  ;;  %1027 = vlog2.f32 %v463_v23  ;;  %vm660_vm12 = vcmp.eq.f32.partialorder %v558_v53, inf }
 0x165   :  { %v827_v58 = vadd.f32 %v826_v12, %v700_v3  ;;  %v797_v15 = vand.u32 2147483647, %v781_v10  ;;  %v1022_v22 = vpop.eup %1021  ;;  %v657_v26 = vsel %vm655_vm11, %v656_v28, %v654_v63  ;;  %v543_v30 = vadd.f32 %v527_v24, %v463_v23 }
 0x166   :  { %v685_v60 = vmul.f32 2.0, %v657_v26  ;;  %v559_v34 = vmul.f32 %v527_v24, %v463_v23  ;;  %1029 = vlog2.f32 %v527_v24  ;;  %v846_v44 = vadd.f32 %v845_v29, %v527_v24 }
 0x167   :  { %v813_v31 = vmul.f32 0.5, %v797_v15  ;;  %v765_v51 = vmul.f32 0.6931472, %v1022_v22  ;;  %v663_v18 = vand.u32 2147483648, %v558_v53  ;;  %vm662_vm13 = vcmp.eq.f32.partialorder %v558_v53, 0.0 }
 0x168   :  { %v701_v36 = vsub.f32 %v1590_v0, %v685_v60  ;;  %1031 = vrsqrt.f32 %v559_v34  ;;  %870 = vst [vmem:[%s1640_s3 + $0x8] sm:$0xff] %v846_v44  ;;  %vm667_vm14 = vcmp.eq.f32.partialorder %v559_v34, inf  ;;  %v670_v6 = vand.u32 2147483648, %v559_v34 }
 0x169   :  { %v861_v14 = vadd.f32 %v860_v2, %v813_v31  ;;  %vm669_vm15 = vcmp.eq.f32.partialorder %v559_v34, 0.0 }
 0x16a   :  { %v1024_v35 = vpop.eup %1023  ;;  %v828_v57 = vadd.f32 %v827_v58, %v701_v36 }
 0x16b   :  { %v1026_v27 = vpop.eup %1025  ;;  %v733_v21 = vmul.f32 0.6931472, %v1024_v35 }
 0x16c   :  { %v659_v5 = vmul.f32 %v1026_v27, %v558_v53 }
 0x16d   :  { %v782_v46 = vsub.f32 %v733_v21, %v765_v51 }
 0x16e   :  { %v661_v39 = vsel %vm660_vm12, %v558_v53, %v659_v5  ;;  %v1028_v7 = vpop.eup %1027 }
 0x16f   :  { %v664_v47 = vsel %vm662_vm13, %v663_v18, %v661_v39  ;;  %v798_v0 = vand.u32 2147483647, %v782_v46  ;;  %v767_v40 = vmul.f32 0.6931472, %v1028_v7 }
 0x170   :  { %v1030_v50 = vpop.eup %1029  ;;  %v686_v37 = vmul.f32 2.0, %v664_v47 }
 0x171   :  { %v814_v49 = vmul.f32 0.5, %v798_v0  ;;  %v735_v61 = vmul.f32 0.6931472, %v1030_v50 }
 0x172   :  { %v1032_v1 = vpop.eup %1031  ;;  %v702_v13 = vsub.f32 %v542_v59, %v686_v37 }
 0x173   :  { %v862_v56 = vadd.f32 %v861_v14, %v814_v49  ;;  %v666_v41 = vmul.f32 %v1032_v1, %v559_v34  ;;  %v783_v62 = vsub.f32 %v735_v61, %v767_v40 }
 0x174   :  { %v829_v4 = vadd.f32 %v828_v57, %v702_v13 }
 0x175   :  { %v668_v52 = vsel %vm667_vm14, %v559_v34, %v666_v41  ;;  %v799_v8 = vand.u32 2147483647, %v783_v62 }
 0x176   :  { %v671_v55 = vsel %vm669_vm15, %v670_v6, %v668_v52 }
 0x177   :  { %v687_v38 = vmul.f32 2.0, %v671_v55  ;;  %v815_v25 = vmul.f32 0.5, %v799_v8 }
 0x179   :  { %v703_v9 = vsub.f32 %v543_v30, %v687_v38  ;;  %v863_v16 = vadd.f32 %v862_v56, %v815_v25 }
 0x17b   :  { %v830_v19 = vadd.f32 %v829_v4, %v703_v9  ;;  %871 = vst [vmem:[%s1640_s3 + $0x10] sm:$0xff] %v863_v16 }
 0x17d   :  { %831 = vst [vmem:[%s1640_s3] sm:$0xff] %v830_v19 }

</bundles_post_ra>
